<compile_context>
chip_gen: v5e
topology: v5e:2x2
jax: 0.10.0
libtpu: 0.0.40
codegen_flags: <defaults>
</compile_context>

<pallas_src>
import functools

import jax
import jax.numpy as jnp
from jax.experimental import pallas as pl
from jax.experimental.pallas import tpu as pltpu

_LANE = 128
_SUBLANE = 8
_TM_CAP = 512      # output-row tile cap
_TK_CAP = 2048     # reduction (neighbour) tile cap


def _round_up(x, m):
    return ((x + m - 1) // m) * m


def _choose_tiles(n, batch):
    """Pick (TM, TK, n_pad) so both tiles exactly divide the padded node count.

    Never falls back to a full NxN block for large N (that could exceed v7x's
    64 MiB physical VMEM while still fitting v5e/v6e) — instead N is padded up
    to a tile multiple.
    """
    if n <= _TM_CAP:
        n_pad = _round_up(max(n, _SUBLANE), _SUBLANE)
        tm = n_pad
        tk = n_pad                      # full (padded) extent: no lane constraint
    else:
        tm = _TM_CAP
        n_pad = _round_up(n, tm)
        if n_pad <= _TK_CAP:
            tk = n_pad
        else:
            tk = max(t for t in (2048, 1024, 512) if n_pad % t == 0)

    # v7x megacore: try to expose >= 2 iterations on the "parallel" grid axes.
    if batch * (n_pad // tm) < 2:
        half = tm // 2
        if half >= _SUBLANE and half % _SUBLANE == 0 and n_pad % half == 0:
            tm = half
    return tm, tk, n_pad


def _gcn_kernel(adj_ref, h_ref, o_ref, acc_ref, *, deg_col):
    # adj_ref: (TM, TK)       bf16   adjacency tile ({0,1} -> exact in bf16)
    # h_ref  : (TK, c_out_p)  bf16   projected feats [x@W.T + b | ones | 0...]
    # o_ref  : (TM, c_out_p)         output tile (resident across K)
    # acc_ref: (TM, c_out_p)  f32    running adj @ h_aug (col deg_col = degree)
    k = pl.program_id(2)

    @pl.when(k == 0)
    def _init():
        acc_ref[...] = jnp.zeros_like(acc_ref)

    # bf16 x bf16 -> f32 accumulation on the MXU; the ones column of h makes
    # the degree a free extra MXU output column (no XLU reduce needed).
    acc_ref[...] += jnp.dot(adj_ref[...], h_ref[...],
                            preferred_element_type=jnp.float32)

    @pl.when(k == pl.num_programs(2) - 1)
    def _finalize():
        acc = acc_ref[...]
        deg = acc[:, deg_col:deg_col + 1]                  # (TM, 1) exact degree
        inv_deg = pl.reciprocal(deg, approx=False)
        o_ref[...] = (acc * inv_deg).astype(o_ref.dtype)


def gcn_layer(node_feats, adj_matrix, weight, bias):
    """node_feats: [B, N, c_in], adj_matrix: [B, N, N] with {0,1} entries,
       weight: [c_out, c_in] (PyTorch nn.Linear layout), bias: [c_out]."""
    B, N, c_in = node_feats.shape
    c_out = weight.shape[0]

    # Lane-dense accumulator/output width; reserve one padded column (index
    # c_out) for the fused degree.
    c_out_p = _round_up(c_out + 1, _LANE)
    deg_col = c_out

    # c_in is small: project once in the wrapper (tiny XLA matmul) so the
    # kernel's only matmul is the big N^2 aggregation at full lane width.
    h = jnp.einsum("bni,oi->bno", node_feats.astype(jnp.float32),
                   weight.astype(jnp.float32)) + bias.astype(jnp.float32)
    h_aug = jnp.concatenate(
        [h,
         jnp.ones((B, N, 1), jnp.float32),                       # degree column
         jnp.zeros((B, N, c_out_p - c_out - 1), jnp.float32)],    # lane padding
        axis=-1)

    TM, TK, N_pad = _choose_tiles(N, B)
    pad_n = N_pad - N

    # bf16 operands for the dominant B*N^2 HBM traffic + single-pass MXU.
    adj_p = jnp.pad(adj_matrix,
                    ((0, 0), (0, pad_n), (0, pad_n))).astype(jnp.bfloat16)
    h_p = jnp.pad(h_aug, ((0, 0), (0, pad_n), (0, 0))).astype(jnp.bfloat16)

    grid = (B, N_pad // TM, N_pad // TK)

    out_padded = pl.pallas_call(
        functools.partial(_gcn_kernel, deg_col=deg_col),
        out_shape=jax.ShapeDtypeStruct((B, N_pad, c_out_p), node_feats.dtype),
        grid_spec=pltpu.PrefetchScalarGridSpec(
            num_scalar_prefetch=0,
            grid=grid,
            in_specs=[
                # adjacency tile: (b, i, k)
                pl.BlockSpec((pl.Squeezed(), TM, TK),
                             lambda b, i, k: (b, i, k)),
                # projected features for the K rows: (b, k)
                pl.BlockSpec((pl.Squeezed(), TK, c_out_p),
                             lambda b, i, k: (b, k, 0)),
            ],
            out_specs=pl.BlockSpec((pl.Squeezed(), TM, c_out_p),
                                   lambda b, i, k: (b, i, 0)),
            scratch_shapes=[
                pltpu.VMEM((TM, c_out_p), jnp.float32),   # adj @ h accumulator
            ],
        ),
        compiler_params=pltpu.CompilerParams(
            # batch and output-row tiles are independent (megacore-shardable);
            # K is the reduction axis -> last and "arbitrary".
            dimension_semantics=("parallel", "parallel", "arbitrary"),
        ),
    )(adj_p, h_p)

    # Padded node rows have degree 0 (nan) and padded lanes hold the degree /
    # zeros — both are sliced off here.
    return out_padded[:, :N, :c_out]


def gcn_ref(node_feats, adj_matrix, weight, bias):
    """Pure-JAX f32 reference matching the PyTorch module."""
    num_neighbours = jnp.sum(adj_matrix, axis=-1, keepdims=True)
    h = jnp.einsum("bni,oi->bno", node_feats, weight) + bias
    out = jnp.einsum("bnm,bmo->bno", adj_matrix, h)
    return out / num_neighbours


if __name__ == "__main__":
    # Small, GCN-consistent shapes: batch=2, nodes=8, c_in=16, c_out=32.
    B, N, C_IN, C_OUT = 2, 8, 16, 32

    key = jax.random.PRNGKey(0)
    k_x, k_adj, k_w, k_b = jax.random.split(key, 4)

    node_feats = jax.random.normal(k_x, (B, N, C_IN), dtype=jnp.float32)

    # Adjacency with self-loops so degrees are >= 1 (no div-by-zero).
    adj_rand = (jax.random.uniform(k_adj, (B, N, N)) > 0.5).astype(jnp.float32)
    adj_matrix = jnp.clip(adj_rand + jnp.eye(N, dtype=jnp.float32)[None],
                          0.0, 1.0)

    # nn.Linear-style deterministic init: U(-1/sqrt(c_in), 1/sqrt(c_in)).
    bound = 1.0 / jnp.sqrt(jnp.float32(C_IN))
    weight = jax.random.uniform(k_w, (C_OUT, C_IN), jnp.float32, -bound, bound)
    bias = jax.random.uniform(k_b, (C_OUT,), jnp.float32, -bound, bound)

    out = jax.block_until_ready(gcn_layer(node_feats, adj_matrix, weight, bias))
    ref = gcn_ref(node_feats, adj_matrix, weight, bias)

    assert out.shape == (B, N, C_OUT)
    max_err = float(jnp.max(jnp.abs(out - ref)))
    # The projected features are fed to the MXU in bf16 (per perf review), so
    # expect ~2^-9 relative rounding vs. the all-f32 reference.
    assert jnp.allclose(out, ref, atol=3e-2, rtol=3e-2), max_err

    print("KERNEL_OK")
</pallas_src>

<mosaic_0001>
module attributes {stable_mosaic.version = 11 : i64} {
  func.func @_gcn_kernel(%arg0: i32, %arg1: i32, %arg2: i32, %arg3: memref<1x8x8xbf16, #tpu.memory_space<vmem>>, %arg4: memref<1x8x128xbf16, #tpu.memory_space<vmem>>, %arg5: memref<1x8x128xf32, #tpu.memory_space<vmem>>, %arg6: memref<8x128xf32, #tpu.memory_space<vmem>>) attributes {dimension_semantics = [#tpu.dimension_semantics<parallel>, #tpu.dimension_semantics<parallel>, #tpu.dimension_semantics<arbitrary>], iteration_bounds = array<i64: 2, 1, 1>, scalar_prefetch = 0 : i64, scratch_operands = 1 : i64, tpu.core_type = #tpu.core_type<tc>, window_params = [{transform_indices = @transform_0, window_bounds = array<i64: 1, 8, 8>}, {transform_indices = @transform_1, window_bounds = array<i64: 1, 8, 128>}, {transform_indices = @transform_2, window_bounds = array<i64: 1, 8, 128>}]} {
    %c0_i32 = arith.constant 0 : i32
    %0 = arith.cmpi eq, %arg2, %c0_i32 : i32
    %1 = arith.extui %0 : i1 to i32
    %c0_i32_0 = arith.constant 0 : i32
    %2 = arith.cmpi ne, %1, %c0_i32_0 : i32
    scf.if %2 {
      %cst_12 = arith.constant 0.000000e+00 : f32
      %14 = vector.broadcast %cst_12 : f32 to vector<8x128xf32>
      %c0_13 = arith.constant 0 : index
      %c0_14 = arith.constant 0 : index
      %15 = vector.load %arg6[%c0_13, %c0_14] : memref<8x128xf32, #tpu.memory_space<vmem>>, vector<8x128xf32>
      tpu.vector_store %arg6[%c0_13, %c0_14], %14 {strides = array<i32>} : memref<8x128xf32, #tpu.memory_space<vmem>>, vector<8x128xf32>,
    } else {
    }
    %c0 = arith.constant 0 : index
    %c0_1 = arith.constant 0 : index
    %3 = vector.load %arg6[%c0, %c0_1] : memref<8x128xf32, #tpu.memory_space<vmem>>, vector<8x128xf32>
    %c0_2 = arith.constant 0 : index
    %c0_3 = arith.constant 0 : index
    %c0_4 = arith.constant 0 : index
    %4 = vector.load %arg3[%c0_2, %c0_3, %c0_4] : memref<1x8x8xbf16, #tpu.memory_space<vmem>>, vector<1x8x8xbf16>
    %5 = vector.shape_cast %4 : vector<1x8x8xbf16> to vector<8x8xbf16>
    %c0_5 = arith.constant 0 : index
    %c0_6 = arith.constant 0 : index
    %c0_7 = arith.constant 0 : index
    %6 = vector.load %arg4[%c0_5, %c0_6, %c0_7] : memref<1x8x128xbf16, #tpu.memory_space<vmem>>, vector<1x8x128xbf16>
    %7 = vector.shape_cast %6 : vector<1x8x128xbf16> to vector<8x128xbf16>
    %cst = arith.constant dense<0.000000e+00> : vector<8x128xf32>
    %8 = tpu.matmul %5, %7, %cst {dimension_numbers = #tpu.dot_dimension_numbers<[1], [0], [0], [1], [0, 0, 1, 1], [], []>} : vector<8x8xbf16>, vector<8x128xbf16>, vector<8x128xf32> -> vector<8x128xf32>
    %9 = arith.addf %3, %8 : vector<8x128xf32>
    %c0_8 = arith.constant 0 : index
    %c0_9 = arith.constant 0 : index
    %10 = vector.load %arg6[%c0_8, %c0_9] : memref<8x128xf32, #tpu.memory_space<vmem>>, vector<8x128xf32>
    tpu.vector_store %arg6[%c0_8, %c0_9], %9 {strides = array<i32>} : memref<8x128xf32, #tpu.memory_space<vmem>>, vector<8x128xf32>,
    %c0_i32_10 = arith.constant 0 : i32
    %11 = arith.cmpi eq, %arg2, %c0_i32_10 : i32
    %12 = arith.extui %11 : i1 to i32
    %c0_i32_11 = arith.constant 0 : i32
    %13 = arith.cmpi ne, %12, %c0_i32_11 : i32
    scf.if %13 {
      %c0_12 = arith.constant 0 : index
      %c0_13 = arith.constant 0 : index
      %14 = vector.load %arg6[%c0_12, %c0_13] : memref<8x128xf32, #tpu.memory_space<vmem>>, vector<8x128xf32>
      %15 = vector.extract_strided_slice %14 {offsets = [0, 32], sizes = [8, 1], strides = [1, 1]} : vector<8x128xf32> to vector<8x1xf32>
      %16 = tpu.reciprocal %15 : vector<8x1xf32> -> vector<8x1xf32>
      %17 = vector.broadcast %16 : vector<8x1xf32> to vector<8x128xf32>
      %18 = arith.mulf %14, %17 : vector<8x128xf32>
      %c0_14 = arith.constant 0 : index
      %c0_15 = arith.constant 0 : index
      %c0_16 = arith.constant 0 : index
      %19 = vector.load %arg5[%c0_14, %c0_15, %c0_16] : memref<1x8x128xf32, #tpu.memory_space<vmem>>, vector<1x8x128xf32>
      %20 = vector.shape_cast %19 : vector<1x8x128xf32> to vector<8x128xf32>
      %21 = vector.shape_cast %18 : vector<8x128xf32> to vector<1x8x128xf32>
      tpu.vector_store %arg5[%c0_14, %c0_15, %c0_16], %21 {strides = array<i32>} : memref<1x8x128xf32, #tpu.memory_space<vmem>>, vector<1x8x128xf32>,
    } else {
    }
    return
  }
  func.func @transform_0(%arg0: i32, %arg1: i32, %arg2: i32) -> (i32, i32, i32) {
    %c0_i32 = arith.constant 0 : i32
    return %arg0, %arg1, %arg2 : i32, i32, i32
  }
  func.func @transform_1(%arg0: i32, %arg1: i32, %arg2: i32) -> (i32, i32, i32) {
    %c0_i32 = arith.constant 0 : i32
    %c0_i32_0 = arith.constant 0 : i32
    return %arg0, %arg2, %c0_i32 : i32, i32, i32
  }
  func.func @transform_2(%arg0: i32, %arg1: i32, %arg2: i32) -> (i32, i32, i32) {
    %c0_i32 = arith.constant 0 : i32
    %c0_i32_0 = arith.constant 0 : i32
    return %arg0, %arg1, %c0_i32 : i32, i32, i32
  }
}

</mosaic_0001>

<bundles_post_ra>
// kernel: tpu_custom_call.1
= control target key start
LH: loop header
LB: loop body
LE: loop exit
PB: predicated region body
PF: predicated region fallthrough
CT: control target
= control target key end

     0   :  { %7 = vsyncpa [#allocation4], 0  ;;  %s793_s0 = inlined_call_operand.hbm [shape: bf16[2,8,8], index: 0, kind: input, shape index: {}]   ;;  %s794_s1 = inlined_call_operand.hbm [shape: bf16[2,8,128], index: 1, kind: input, shape index: {}]   ;;  %s795_s2 = inlined_call_operand.hbm [shape: f32[2,8,128], index: 2, kind: output, shape index: {}]  }
   0x1   :  { %9 = vsyncpa [#allocation4 + $0x1], 0 }
   0x2   :  { %10 = vsyncpa [#allocation7], 0 }
   0x3   :  { %12 = vsyncpa [#allocation7 + $0x1], 0 }
   0x4   :  { %13 = vsyncpa [#allocation5], 0 }
   0x5   :  { %15 = vsyncpa [#allocation5 + $0x1], 0  ;;  %s664_s9 = smov 0   ;;  %s666_s10 = smov 0  }
   0x6   :  { %s668_s11 = smov 0   ;;  %s670_s12 = smov 0  }
   0x7   :  { %s672_s13 = smov 0   ;;  %s674_s14 = smov 0  }
   0x8 LB: > { %s412_s15 = sadd.s32 4294967295, %s646_s14   ;;  %s413_s16 = sadd.s32 4294967294, %s646_s14   ;;  %s646_s14 = sphi %s674_s14, %s21_s14   ;;  %s642_s13 = sphi %s672_s13, %s804_s13   ;;  %s638_s12 = sphi %s670_s12, %s803_s12   ;;  %s634_s11 = sphi %s668_s11, %s802_s11   ;;  %s630_s10 = sphi %s666_s10, %s801_s10   ;;  %s626_s9 = sphi %s664_s9, %s800_s9  }
   0x9   : > { %s40_s17 = sadd.s32 1, %s642_s13  ;;  %s51_s18 = sadd.s32 1, %s634_s11 }
   0xa   : > { %p42_p0 = scmp.ge.s32.totalorder %s40_s17, 2  ;;  %p58_p1 = scmp.ne.s32.totalorder %s634_s11, %s630_s10 }
   0xb   : > { %p59_p2 = scmp.eq.s32.totalorder %s646_s14, 0  ;;  %p64_p3 = scmp.ne.s32.totalorder %s630_s10, %s626_s9 }
   0xc   : > { %s806_s17 = smov (%p42_p0, %s40_s17), 0  ;;  %p65_p5 = scmp.eq.s32.totalorder %s412_s15, 0 }
   0xd   : > { %p705_p4 = por %p59_p2, %p58_p1  ;;  %s44_s20 = ssub.s32 %s642_s13, %s806_s17 }
   0xe   : > { %p118_p6 = scmp.eq.s32.totalorder %s412_s15, 1  ;;  %p49_p7 = scmp.eq.s32.totalorder %s44_s20, 0 }
   0xf   : > { %p711_p8 = por %p65_p5, %p64_p3  ;;  %p124_p10 = scmp.eq.s32.totalorder %s413_s16, 1 }
  0x10   : > { %p715_p9 = por %p118_p6, %p58_p1  ;;  %p415_p12 = scmp.ge.s32.totalorder %s646_s14, 2 }
  0x11   : > { %s720_s23 = scalar_select %p49_p7, %s634_s11, %s51_s18  }
  0x12   : > { %p722_p11 = por %p124_p10, %p64_p3  ;;  %p446_p13 = scmp.lt.s32.totalorder %s646_s14, 2 }
  0x13   : > { %s144_s25 = sand.u32 1, %s634_s11   ;;  %s417_s27 = sshll.u32 %s642_s13, 2 }
  0x14   : > { %s416_s26 = sshll.u32 %s144_s25, 2  ;;  %s154_s30 = scalar_lea.hbm %s793_s0, %s417_s27 }
  0x15   : > { %s148_s3 = scalar_lea.vmem [#allocation3], %s416_s26  ;;  %s156_s5 = sshll.u32 %s154_s30, 4  ;;  %s157_s5 = int_to_ptr.hbm [resolvable:$true] %s156_s5 }
  0x16   : > { %s158_s4 = sshll.u32 %s148_s3, 4  ;;  %p436_p0 = pnand %p446_p13, %p705_p4  ;;  %s159_s4 = int_to_ptr.vmem [resolvable:$true] %s158_s4 }
  0x17   : > { %p420_p1 = scmp.ge.s32.totalorder %s646_s14, 1  ;;  %p183_p2 = scmp.lt.s32.totalorder %s646_s14, 3 }
  0x18   : > { %s145_s6 = scalar_lea.sflag [#allocation4], %s144_s25  ;;  %s174_s15 = scalar_lea.hbm %s794_s1, %s417_s27 }
  0x19   : > { %438 = dma.hbm_to_vmem [thread:$0]  (!%p436_p0), %s157_s5, 64, %s159_s4, %s145_s6  }
  0x1a   : > { %p184_p3 = pnand %p420_p1, %p183_p2  ;;  %s169_s16 = scalar_lea.vmem [#allocation6], %s416_s26 }
  0x1b   : > { %s178_s18 = sshll.u32 %s169_s16, 4  ;;  %s176_s20 = sshll.u32 %s174_s15, 4  ;;  %s179_s18 = int_to_ptr.vmem [resolvable:$true] %s178_s18  ;;  %s177_s20 = int_to_ptr.hbm [resolvable:$true] %s176_s20 }
  0x1c   : > { %s166_s28 = scalar_lea.sflag [#allocation7], %s144_s25  ;;  %187 = sbr.rel (%p184_p3) target bundleno = 304 (0x130), region = 28 }
  0x1d   : > { %441 = dma.hbm_to_vmem [thread:$0]  (!%p436_p0), %s177_s20, 64, %s179_s18, %s166_s28  }
  0x1e   : > { %s741_s19 = sand.u32 (!%p184_p3), 1, %s630_s10  }
  0x1f   : > { %s421_s29 = sshll.u32 (!%p184_p3), %s741_s19, 2  ;;  %s190_s30 = scalar_lea.sflag (!%p184_p3), [#allocation4], %s741_s19 }
  0x20   : > { %s193_s3 = scalar_lea.vmem (!%p184_p3), [#allocation3], %s421_s29 }
  0x21   : > { %613 = dma.done.wait (%p711_p8), %s190_s30, 64  }
  0x22   : > { %615 = vsyncadd (%p711_p8), %s190_s30, 4294967232  ;;  %s200_s26 = scalar_lea.sflag [#allocation7], %s741_s19  ;;  %s203_s25 = scalar_lea.vmem [#allocation6], %s421_s29 }
  0x23   : > { %617 = dma.done.wait (%p711_p8), %s200_s26, 64  }
  0x24   : > { %619 = vsyncadd (%p711_p8), %s200_s26, 4294967232  ;;  %vm243_vm0 = vcmask 1043456   ;;  %v238_v0 = vld [vmem:[%s203_s25] sm:$0xf]  ;;  %v237_v2 = vld [vmem:[%s193_s3] sm:$0xf] }
  0x25   : > { %v245_v1 = vsel %vm243_vm0, %v238_v0, 0  ;;  %vm239_vm1 = vcmask 64512   ;;  %v648_v3 = vmov 32   ;;  %s423_s21 = sshll.u32 %s741_s19, 3  ;;  %s426_s27 = sshll.u32 %s638_s12, 3 }
  0x26   : > { %254 = vmatpush.bf16.msra.mxu0 %v245_v1  ;;  %497 = vset.pattern.permute.xlu0 %v648_v3  ;;  %s299_s6 = scalar_lea.hbm %s795_s2, %s426_s27  ;;  %s229_s7 = scalar_lea.vmem [#allocation8], %s423_s21 }
  0x27   : > { %s301_s8 = sshll.u32 %s229_s7, 4  ;;  %s303_s15 = sshll.u32 %s299_s6, 4  ;;  %s302_s8 = int_to_ptr.vmem [resolvable:$true] %s301_s8  ;;  %s304_s15 = int_to_ptr.hbm [resolvable:$true] %s303_s15 }
  0x28   : > { %s288_s16 = scalar_lea.sflag [#allocation5], %s741_s19  ;;  %s574_s18 = sshra.s32 %s304_s15, 4  ;;  %s575_s18 = int_to_ptr.hbm [resolvable:$true] %s574_s18 }
  0x29   : > { %424 = vmatmul.msk.bf16.vlgmr.msra.gmra.mxu0 %vm239_vm1, %v237_v2  ;;  %s576_s20 = scalar_lea.hbm %s575_s18, 8  ;;  %s580_s29 = scalar_lea.hbm %s795_s2, 16 }
  0x2a   : > { %p577_p4 = scmp.ne.s32.totalorder %s575_s18, %s576_s20  ;;  %p581_p7 = scmp.lt.s32.totalorder %s575_s18, %s795_s2 }
  0x2b   : > { %p582_p8 = scmp.lt.s32.totalorder %s580_s29, %s576_s20 }
  0x2c   : > { %p578_p5 = pnand %p577_p4, %p715_p9 }
  0x2d   : > { %p583_p10 = por %p582_p8, %p581_p7 }
  0x2e   : > { %p579_p6 = pneg %p578_p5 }
  0x30   : > { %p584_p13 = pnand %p583_p10, %p579_p6 }
  0xa6   : > { %v256_v4 = vpop.f32.mrf.mxu0 }
  0xa7   : > { %498 = vrcp.f32 %v256_v4  ;;  %v277_v9 = vand.u32 2147483648, %v256_v4  ;;  %v275_v11 = vand.u32 2147483647, %v256_v4  ;;  %vm271_vm3 = vweird.f32 %v256_v4 }
  0xa9   : > { %v278_v13 = vor.u32 1.1754944e-38, %v277_v9  ;;  %vm276_vm5 = vcmp.eq.f32.partialorder %v275_v11, 8.507059e+37 }
  0xad   : > { %v499_v5 = vpop.eup %498 }
  0xae   : > { %v258_v6 = vpop.f32.mrf.mxu0  ;;  %v267_v7 = vmul.f32 %v499_v5, %v256_v4  ;;  %vm272_vm2 = vweird.f32 %v499_v5 }
  0xaf   : > { %vm273_vm4 = vmor %vm271_vm3, %vm272_vm2 }
  0xb0   : > { %v268_v8 = vsub.f32 1.0, %v267_v7 }
  0xb2   : > { %v269_v10 = vmul.f32 %v499_v5, %v268_v8 }
  0xb4   : > { %v270_v12 = vadd.f32 %v499_v5, %v269_v10 }
  0xb6   : > { %v274_v14 = vsel %vm273_vm4, %v499_v5, %v270_v12 }
  0xb7   : > { %v279_v15 = vsel %vm276_vm5, %v278_v13, %v274_v14 }
  0xb8   : > { %282 = vperm.xlu0 %497, %v279_v15  }
 0x12a   : > { %v283_v16 = vpop.permute.xlu0 %282 }
 0x12b   : > { %v285_v17 = vmul.f32 %v283_v16, %v256_v4 }
 0x12d   : > { %286 = vst [vmem:[%s229_s7] sm:$0xff] %v285_v17 }
 0x12e   : > { %587 = shalt.err (!%p584_p13)
}
 0x12f   : > { %433 = dma.vmem_to_hbm [thread:$0]  (%p715_p9), %s302_s8, 128, %s304_s15, %s288_s16  }
 0x130 PF: > { %s315_s19 = sand.u32 1, %s626_s9   ;;  %p443_p0 = pnand %p415_p12, %p722_p11 }
 0x131   : > { %s316_s26 = scalar_lea.sflag [#allocation5], %s315_s19 }
 0x132   : > { %p444_p1 = pneg %p443_p0 }
 0x134   : > { %621 = dma.done.wait (%p444_p1), %s316_s26, 128  }
 0x135   : > { %623 = vsyncadd (%p444_p1), %s316_s26, 4294967168  ;;  %s21_s14 = sadd.s32 1, %s646_s14   ;;  %s800_s9 = smov %s630_s10 }
 0x136   : > { %p18_p2 = scmp.ge.s32.totalorder %s21_s14, 4   ;;  %s801_s10 = smov %s634_s11 }
 0x137   : > { %s802_s11 = smov %s720_s23  ;;  %s803_s12 = smov %s642_s13 }
 0x138   : > { %s804_s13 = smov %s806_s17  ;;  %20 = sbr.rel (!%p18_p2) target bundleno = 8 (0x8), region = 94 }
 0x13d   :  { %322 = vsyncpa [#allocation4], 1 }
 0x13e   :  { %324 = vsyncpa [#allocation4 + $0x1], 1 }
 0x13f   :  { %325 = vsyncpa [#allocation7], 1 }
 0x140   :  { %327 = vsyncpa [#allocation7 + $0x1], 1 }
 0x141   :  { %328 = vsyncpa [#allocation5], 1 }
 0x142   :  { %330 = vsyncpa [#allocation5 + $0x1], 1 }

</bundles_post_ra>
